<compile_context>
chip_gen: v5e
topology: v5e:2x2
jax: 0.10.0
libtpu: 0.0.40
codegen_flags: <defaults>
</compile_context>

<pallas_src>
import functools

import jax
import jax.numpy as jnp
from jax.experimental import pallas as pl
from jax.experimental.pallas import tpu as pltpu

LANES = 128
SUBLANES = 8
_MAX_BLOCK_BYTES = 2 << 20  # ~2 MiB of f32 per array per block (x2 pipeline bufs)


def _lif_kernel_scalar_v(x_ref, v_ref, out_ref, v_next_ref, *,
                         inv_tau, v_threshold, v_reset):
    """LIF step when the membrane state is a single scalar (held in SMEM)."""
    x = x_ref[...]
    v = v_ref[0]                              # scalar read from SMEM
    v_new = v + (x - v) * inv_tau             # == v + (-v + x) / tau
    spike = v_new >= v_threshold
    out_ref[...] = jnp.where(spike, v_threshold, 0.0).astype(out_ref.dtype)
    v_next_ref[...] = jnp.where(spike, v_reset, v_new).astype(v_next_ref.dtype)


def _lif_kernel_array_v(x_ref, v_ref, out_ref, v_next_ref, *,
                        inv_tau, v_threshold, v_reset):
    """LIF step when the membrane state is a full per-element array."""
    x = x_ref[...]
    v = v_ref[...]
    v_new = v + (x - v) * inv_tau             # == v + (-v + x) / tau
    spike = v_new >= v_threshold
    out_ref[...] = jnp.where(spike, v_threshold, 0.0).astype(out_ref.dtype)
    v_next_ref[...] = jnp.where(spike, v_reset, v_new).astype(v_next_ref.dtype)


def _choose_width(total):
    """Widest lane dim (multiple of 128) that divides `total` with >= 8 rows."""
    for w in (4096, 2048, 1024, 512, 256):
        if total % w == 0 and total // w >= SUBLANES:
            return w
    return LANES


def _choose_block_rows(rows, width):
    """Block rows: full array for tiny inputs, otherwise a multiple of 8 capped
    at ~2 MiB per array, keeping >= 2 grid steps when there is enough work so
    both v7x TensorCores get a share of the parallel grid."""
    if rows <= SUBLANES:
        return rows
    max_rows = max(SUBLANES,
                   (_MAX_BLOCK_BYTES // (4 * width)) // SUBLANES * SUBLANES)
    br = min(max_rows, (rows // SUBLANES) * SUBLANES)
    if br * 2 > rows and rows >= 2 * SUBLANES:
        br = (((rows + 1) // 2) // SUBLANES) * SUBLANES
    return max(br, SUBLANES)


@functools.partial(jax.jit, static_argnames=("tau", "v_threshold", "v_reset"))
def lif_forward(x, v, *, tau=0.1, v_threshold=1.0, v_reset=0.0):
    """One LIF forward step.

    x : float array of any shape (e.g. NCHW [N, C, H, W]).
    v : scalar (module's initial state) or array broadcastable to x.shape.
    Returns (out, v_next), both with x's shape, float32.
    """
    x = jnp.asarray(x, jnp.float32)
    v = jnp.asarray(v, jnp.float32)
    scalar_v = v.size == 1

    orig_shape = x.shape
    n = x.size
    inv_tau = float(1.0 / tau)

    # Flatten to a wide lane-dense 2-D slab. Only pad when the element count
    # is not already a multiple of 128 (rare for NCHW activations), to avoid
    # extra full-array HBM copies around a memory-bound kernel.
    pad = (-n) % LANES
    x_flat = x.reshape(-1)
    if pad:
        x_flat = jnp.pad(x_flat, (0, pad))
    total = n + pad
    width = _choose_width(total)
    rows = total // width
    x2d = x_flat.reshape(rows, width)

    block_rows = _choose_block_rows(rows, width)
    grid = (pl.cdiv(rows, block_rows),)
    blk = pl.BlockSpec((block_rows, width), lambda i: (i, 0))

    out_shape = (jax.ShapeDtypeStruct((rows, width), jnp.float32),
                 jax.ShapeDtypeStruct((rows, width), jnp.float32))
    compiler_params = pltpu.CompilerParams(
        dimension_semantics=("parallel",),
        vmem_limit_bytes=32 * 1024 * 1024,
    )

    if scalar_v:
        # Common init case (v = v_reset): keep the state in SMEM instead of
        # streaming a broadcast copy from HBM.
        kernel = functools.partial(_lif_kernel_scalar_v, inv_tau=inv_tau,
                                   v_threshold=v_threshold, v_reset=v_reset)
        out2d, v_next2d = pl.pallas_call(
            kernel,
            out_shape=out_shape,
            grid=grid,
            in_specs=[blk,
                      pl.BlockSpec(memory_space=pltpu.MemorySpace.SMEM)],
            out_specs=[blk, blk],
            compiler_params=compiler_params,
        )(x2d, v.reshape(1))
    else:
        v2d = jnp.broadcast_to(v, orig_shape).reshape(-1)
        if pad:
            v2d = jnp.pad(v2d, (0, pad))
        v2d = v2d.reshape(rows, width)
        kernel = functools.partial(_lif_kernel_array_v, inv_tau=inv_tau,
                                   v_threshold=v_threshold, v_reset=v_reset)
        out2d, v_next2d = pl.pallas_call(
            kernel,
            out_shape=out_shape,
            grid=grid,
            in_specs=[blk, blk],
            out_specs=[blk, blk],
            # in-place membrane update: v (input 1) aliases v_next (output 1)
            input_output_aliases={1: 1},
            compiler_params=compiler_params,
        )(x2d, v2d)

    if pad:
        out = out2d.reshape(-1)[:n].reshape(orig_shape)
        v_next = v_next2d.reshape(-1)[:n].reshape(orig_shape)
    else:
        out = out2d.reshape(orig_shape)
        v_next = v_next2d.reshape(orig_shape)
    return out, v_next


def _lif_reference(x, v, *, tau=0.1, v_threshold=1.0, v_reset=0.0):
    """Pure-JAX reference. Uses the same mul-by-(1/tau) formulation as the
    kernel (within 1 ulp of the spec's division)."""
    x = jnp.asarray(x, jnp.float32)
    v = jnp.broadcast_to(jnp.asarray(v, jnp.float32), x.shape)
    inv_tau = 1.0 / tau
    v_new = v + (x - v) * inv_tau
    spike = (v_new >= v_threshold).astype(x.dtype)
    out = spike * v_threshold
    v_next = spike * v_reset + (1.0 - spike) * v_new
    return out, v_next


if __name__ == "__main__":
    key = jax.random.PRNGKey(0)
    # NCHW input: batch=2, channels=4, spatial=16x16
    x = jax.random.normal(key, (2, 4, 16, 16), dtype=jnp.float32)

    tau, v_threshold, v_reset = 0.1, 1.0, 0.0

    # --- step 1: membrane state is the module's initial scalar (v_reset) ---
    out1, v1 = lif_forward(x, v_reset, tau=tau, v_threshold=v_threshold,
                           v_reset=v_reset)
    jax.block_until_ready((out1, v1))
    out1_ref, v1_ref = _lif_reference(x, v_reset, tau=tau,
                                      v_threshold=v_threshold, v_reset=v_reset)
    assert out1.shape == x.shape and v1.shape == x.shape
    assert jnp.allclose(out1, out1_ref, atol=1e-6), "step-1 out mismatch"
    assert jnp.allclose(v1, v1_ref, atol=1e-6), "step-1 v_next mismatch"

    # --- step 2: membrane state is now a full array (aliased in-place path) ---
    out2, v2 = lif_forward(x, v1, tau=tau, v_threshold=v_threshold,
                           v_reset=v_reset)
    jax.block_until_ready((out2, v2))
    out2_ref, v2_ref = _lif_reference(x, v1, tau=tau,
                                      v_threshold=v_threshold, v_reset=v_reset)
    assert jnp.allclose(out2, out2_ref, atol=1e-6), "step-2 out mismatch"
    assert jnp.allclose(v2, v2_ref, atol=1e-6), "step-2 v_next mismatch"

    # --- robustness: element count not a multiple of 128 (pad path) ---
    x3 = jax.random.normal(jax.random.PRNGKey(1), (3, 5, 7), dtype=jnp.float32)
    o3, vn3 = lif_forward(x3, v_reset, tau=tau, v_threshold=v_threshold,
                          v_reset=v_reset)
    jax.block_until_ready((o3, vn3))
    o3_ref, vn3_ref = _lif_reference(x3, v_reset, tau=tau,
                                     v_threshold=v_threshold, v_reset=v_reset)
    assert jnp.allclose(o3, o3_ref, atol=1e-6), "pad-path out mismatch"
    assert jnp.allclose(vn3, vn3_ref, atol=1e-6), "pad-path v_next mismatch"

    print("KERNEL_OK")
</pallas_src>

<mosaic_0001>
module attributes {stable_mosaic.version = 11 : i64} {
  func.func @_lif_kernel_scalar_v(%arg0: i32, %arg1: memref<8x256xf32, #tpu.memory_space<vmem>>, %arg2: memref<1xf32, #tpu.memory_space<smem>>, %arg3: memref<8x256xf32, #tpu.memory_space<vmem>>, %arg4: memref<8x256xf32, #tpu.memory_space<vmem>>) attributes {dimension_semantics = [#tpu.dimension_semantics<parallel>], iteration_bounds = array<i64: 1>, scalar_prefetch = 0 : i64, scratch_operands = 0 : i64, tpu.core_type = #tpu.core_type<tc>, window_params = [{transform_indices = @transform_0, window_bounds = array<i64: 8, 256>}, {transform_indices = @transform_1, window_bounds = array<i64: 1>}, {transform_indices = @transform_2, window_bounds = array<i64: 8, 256>}, {transform_indices = @transform_3, window_bounds = array<i64: 8, 256>}]} {
    %c0 = arith.constant 0 : index
    %c0_0 = arith.constant 0 : index
    %0 = vector.load %arg1[%c0, %c0_0] : memref<8x256xf32, #tpu.memory_space<vmem>>, vector<8x256xf32>
    %c0_1 = arith.constant 0 : index
    %1 = memref.load %arg2[%c0_1] : memref<1xf32, #tpu.memory_space<smem>>
    %2 = vector.broadcast %1 : f32 to vector<8x256xf32>
    %3 = arith.subf %0, %2 : vector<8x256xf32>
    %cst = arith.constant 1.000000e+01 : f32
    %4 = vector.broadcast %cst : f32 to vector<8x256xf32>
    %5 = arith.mulf %3, %4 : vector<8x256xf32>
    %6 = vector.broadcast %1 : f32 to vector<8x256xf32>
    %7 = arith.addf %6, %5 : vector<8x256xf32>
    %cst_2 = arith.constant 1.000000e+00 : f32
    %8 = vector.broadcast %cst_2 : f32 to vector<8x256xf32>
    %9 = arith.cmpf oge, %7, %8 : vector<8x256xf32>
    %cst_3 = arith.constant 1.000000e+00 : f32
    %cst_4 = arith.constant 0.000000e+00 : f32
    %10 = vector.broadcast %cst_3 : f32 to vector<8x256xf32>
    %11 = vector.broadcast %cst_4 : f32 to vector<8x256xf32>
    %12 = arith.select %9, %10, %11 : vector<8x256xi1>, vector<8x256xf32>
    %c0_5 = arith.constant 0 : index
    %c0_6 = arith.constant 0 : index
    %13 = vector.load %arg3[%c0_5, %c0_6] : memref<8x256xf32, #tpu.memory_space<vmem>>, vector<8x256xf32>
    tpu.vector_store %arg3[%c0_5, %c0_6], %12 {strides = array<i32>} : memref<8x256xf32, #tpu.memory_space<vmem>>, vector<8x256xf32>,
    %cst_7 = arith.constant 0.000000e+00 : f32
    %14 = vector.broadcast %cst_7 : f32 to vector<8x256xf32>
    %15 = arith.select %9, %14, %7 : vector<8x256xi1>, vector<8x256xf32>
    %c0_8 = arith.constant 0 : index
    %c0_9 = arith.constant 0 : index
    %16 = vector.load %arg4[%c0_8, %c0_9] : memref<8x256xf32, #tpu.memory_space<vmem>>, vector<8x256xf32>
    tpu.vector_store %arg4[%c0_8, %c0_9], %15 {strides = array<i32>} : memref<8x256xf32, #tpu.memory_space<vmem>>, vector<8x256xf32>,
    return
  }
  func.func @transform_0(%arg0: i32) -> (i32, i32) {
    %c0_i32 = arith.constant 0 : i32
    %c0_i32_0 = arith.constant 0 : i32
    return %arg0, %c0_i32 : i32, i32
  }
  func.func @transform_1(%arg0: i32) -> i32 {
    %c0_i32 = arith.constant 0 : i32
    %c0_i32_0 = arith.constant 0 : i32
    return %c0_i32 : i32
  }
  func.func @transform_2(%arg0: i32) -> (i32, i32) {
    %c0_i32 = arith.constant 0 : i32
    %c0_i32_0 = arith.constant 0 : i32
    return %arg0, %c0_i32 : i32, i32
  }
  func.func @transform_3(%arg0: i32) -> (i32, i32) {
    %c0_i32 = arith.constant 0 : i32
    %c0_i32_0 = arith.constant 0 : i32
    return %arg0, %c0_i32 : i32, i32
  }
}

</mosaic_0001>

<bundles_post_ra>
// kernel: lif_forward.1
= control target key start
LH: loop header
LB: loop body
LE: loop exit
PB: predicated region body
PF: predicated region fallthrough
CT: control target
= control target key end

     0   :  { %v43_v9 = vmov 0.0   ;;  %s85_s0 = inlined_call_operand.vmem [shape: f32[8,256], index: 0, kind: input, shape index: {}]   ;;  %s86_s1 = inlined_call_operand.<no memory space> [shape: f32[1], index: 1, kind: input, shape index: {}]   ;;  %s87_s2 = inlined_call_operand.vmem [shape: f32[8,256], index: 2, kind: output, shape index: {0}]   ;;  %s88_s3 = inlined_call_operand.vmem [shape: f32[8,256], index: 3, kind: output, shape index: {1}]  }
   0x1   :  { %v14_v0 = vld [vmem:[%s85_s0] sm:$0xff]  ;;  %v17_v1 = vstv %s86_s1  ;;  %v15_v2 = vld [vmem:[%s85_s0 + $0x8] sm:$0xff] }
   0x2   :  { %v18_v3 = vsub.f32 %v14_v0, %v17_v1  ;;  %v19_v4 = vsub.f32 %v15_v2, %v17_v1 }
   0x4   :  { %v20_v5 = vmul.f32 10.0, %v18_v3  ;;  %v21_v6 = vmul.f32 10.0, %v19_v4 }
   0x6   :  { %v22_v7 = vadd.f32 %v20_v5, %v17_v1  ;;  %v23_v8 = vadd.f32 %v21_v6, %v17_v1 }
   0x8   :  { %vm24_vm0 = vcmp.ge.f32.partialorder %v22_v7, 1.0  ;;  %vm25_vm1 = vcmp.ge.f32.partialorder %v23_v8, 1.0 }
   0x9   :  { %v26_v10 = vsel %vm24_vm0, 1.0, %v43_v9  ;;  %v27_v11 = vsel %vm25_vm1, 1.0, %v43_v9  ;;  %v30_v12 = vsel %vm24_vm0, 0.0, %v22_v7  ;;  %v31_v13 = vsel %vm25_vm1, 0.0, %v23_v8 }
   0xa   :  { %28 = vst [vmem:[%s87_s2] sm:$0xff] %v26_v10 }
   0xb   :  { %29 = vst [vmem:[%s87_s2 + $0x8] sm:$0xff] %v27_v11 }
   0xc   :  { %32 = vst [vmem:[%s88_s3] sm:$0xff] %v30_v12 }
   0xd   :  { %33 = vst [vmem:[%s88_s3 + $0x8] sm:$0xff] %v31_v13 }

</bundles_post_ra>
